<compile_context>
chip_gen: v7x
topology: tpu7x:2x2x1
jax: 0.10.0
libtpu: 0.0.40
codegen_flags: <defaults>
</compile_context>

<pallas_src>
import jax
import jax.numpy as jnp
from jax.experimental import pallas as pl
from jax.experimental.pallas import tpu as pltpu


def _ada_ln_kernel(scale_p1_ref, shift_ref, x_ref, o_ref):
    # scale_p1_ref / shift_ref: (TILE_B, 1, D) f32 ("+1" already folded in).
    # x_ref / o_ref:            (TILE_B, TILE_T, D) in the I/O dtype.
    x = x_ref[...].astype(jnp.float32)
    inv_d = 1.0 / x.shape[-1]
    # Issue both cross-lane reductions back-to-back (no serial dependence).
    sum_x = jnp.sum(x, axis=-1, keepdims=True)              # (TILE_B, TILE_T, 1)
    sum_x2 = jnp.sum(x * x, axis=-1, keepdims=True)         # (TILE_B, TILE_T, 1)
    mean = sum_x * inv_d
    var = jnp.maximum(sum_x2 * inv_d - mean * mean, 0.0)    # biased var (nn.LayerNorm)
    xn = (x - mean) * jax.lax.rsqrt(var + 1e-5)             # eps = 1e-5 (PyTorch default)
    out = xn * scale_p1_ref[...] + shift_ref[...]           # (TILE_B,1,D) broadcasts over T
    o_ref[...] = out.astype(o_ref.dtype)


def _vmem_capacity_bytes():
    """Physical VMEM of the local TPU; conservative (v7x) fallback."""
    try:
        info = pltpu.get_tpu_info()
        cap = getattr(info, "vmem_capacity_bytes", None)
        if cap:
            return int(cap)
    except Exception:
        pass
    return 64 << 20


def _divisor_tile(n, max_rows, prefer_mult=8):
    """Largest divisor of n that is <= max_rows, preferring multiples of prefer_mult.

    Always respects max_rows (no unbounded full-n fallback); worst case returns 1.
    """
    if max_rows >= n:
        return n
    best_mult, best_any = None, 1
    d = 1
    while d * d <= n:
        if n % d == 0:
            for t in (d, n // d):
                if t <= max_rows:
                    if t > best_any:
                        best_any = t
                    if t % prefer_mult == 0 and (best_mult is None or t > best_mult):
                        best_mult = t
        d += 1
    return best_mult if best_mult is not None else best_any


def ada_layer_norm(x, timestep, w, b, *, tile_b=None, tile_t=None):
    """x: (B, T, D), timestep: (B, 1, D), w: (2D, D), b: (2D,). Returns x.dtype."""
    B, T, D = x.shape
    out_dtype = x.dtype
    itemsize = jnp.dtype(out_dtype).itemsize

    # ---- Tiny linear in the wrapper (memory-bound; XLA streams w once) ----
    # No f32 copy of the weight: feed it in native dtype, accumulate in f32.
    t2d = timestep.reshape(B, D)
    b_adj = jnp.asarray(b, jnp.float32).at[:D].add(1.0)      # fold "+1" into the bias
    emb = jnp.einsum("bd,ed->be", t2d, jnp.asarray(w),
                     preferred_element_type=jnp.float32) + b_adj    # (B, 2D) f32
    scale_p1 = emb[:, None, :D]                              # (B, 1, D)
    shift = emb[:, None, D:]                                 # (B, 1, D)

    # ---- Generation-aware tile / VMEM budget ----
    vmem_phys = _vmem_capacity_bytes()
    if vmem_phys <= (64 << 20):            # v7x: 64 MiB physical VMEM
        f32_tile_cap, vmem_cap = 4 << 20, 46 << 20
    else:                                  # v5e / v6e: 128 MiB physical VMEM
        f32_tile_cap, vmem_cap = 8 << 20, 96 << 20
    max_rows = max(1, f32_tile_cap // (D * 4))   # rows budget counted in f32 bytes

    auto = tile_b is None and tile_t is None
    if auto:
        if T <= max_rows:
            # Small-T regime: tile over batch, keep the whole sequence per block.
            tile_t = T
            tile_b = _divisor_tile(B, max(1, max_rows // T), prefer_mult=1)
            if tile_b == B and B > 1:      # keep >= 2 grid points for megacore
                tile_b = _divisor_tile(B, B // 2, prefer_mult=1)
        else:
            # Long-T regime: tile over the sequence axis.
            tile_b = 1
            tile_t = _divisor_tile(T, max_rows, prefer_mult=8)
    else:
        tile_b = 1 if tile_b is None else tile_b
        tile_t = T if tile_t is None else tile_t
    assert B % tile_b == 0 and T % tile_t == 0, "tiles must divide (B, T)"

    n_b, n_t = B // tile_b, T // tile_t
    # v7x has 2 TensorCores: avoid a single-point grid when T can be halved.
    if auto and n_b * n_t == 1 and T >= 16 and T % 16 == 0:
        tile_t = T // 2
        n_t = 2

    # VMEM budget: double-buffered in/out tiles in the I/O dtype + f32 temporaries.
    io_tile_bytes = tile_b * tile_t * D * itemsize
    f32_tile_bytes = tile_b * tile_t * D * 4
    needed = 4 * io_tile_bytes + 6 * f32_tile_bytes + (1 << 20)
    vmem_limit = int(min(max(needed, 32 << 20), vmem_cap))

    out = pl.pallas_call(
        _ada_ln_kernel,
        out_shape=jax.ShapeDtypeStruct((B, T, D), out_dtype),
        grid=(n_b, n_t),   # seq axis innermost: scale/shift block re-DMA is elided
        in_specs=[
            pl.BlockSpec((tile_b, 1, D), lambda bi, ti: (bi, 0, 0)),        # scale_p1
            pl.BlockSpec((tile_b, 1, D), lambda bi, ti: (bi, 0, 0)),        # shift
            pl.BlockSpec((tile_b, tile_t, D), lambda bi, ti: (bi, ti, 0)),  # x tile
        ],
        out_specs=pl.BlockSpec((tile_b, tile_t, D), lambda bi, ti: (bi, ti, 0)),
        compiler_params=pltpu.CompilerParams(
            dimension_semantics=("parallel", "parallel"),
            vmem_limit_bytes=vmem_limit,
        ),
    )(scale_p1, shift, x)
    return out


def _reference(x, timestep, w, b):
    emb = jnp.einsum("bsd,ed->bse", timestep.astype(jnp.float32),
                     jnp.asarray(w, jnp.float32)) + jnp.asarray(b, jnp.float32)
    D = x.shape[-1]
    scale, shift = emb[..., :D], emb[..., D:]
    xf = x.astype(jnp.float32)
    mean = jnp.mean(xf, axis=-1, keepdims=True)
    var = jnp.mean((xf - mean) ** 2, axis=-1, keepdims=True)
    xn = (xf - mean) / jnp.sqrt(var + 1e-5)
    return xn * (1.0 + scale) + shift          # f32


if __name__ == "__main__":
    key = jax.random.PRNGKey(0)

    # --- 1) small demo shape matching the module (batch=2, seq=8, n_embd=32) ---
    #        exercises the small-T batch-tiling path.
    B, T, D = 2, 8, 32
    kx, kt, kw, kb, k2 = jax.random.split(key, 5)
    x = jax.random.normal(kx, (B, T, D), dtype=jnp.float32)
    timestep = jax.random.normal(kt, (B, 1, D), dtype=jnp.float32)
    bound = 1.0 / (D ** 0.5)  # nn.Linear default init range (deterministic here)
    w = jax.random.uniform(kw, (2 * D, D), jnp.float32, -bound, bound)
    b = jax.random.uniform(kb, (2 * D,), jnp.float32, -bound, bound)

    out = jax.block_until_ready(ada_layer_norm(x, timestep, w, b))
    ref = _reference(x, timestep, w, b)
    assert out.shape == (B, T, D)
    assert jnp.allclose(out.astype(jnp.float32), ref, atol=1e-4, rtol=1e-4)

    # --- 2) lane-dense D=128, explicit seq tiling path (grid = (B, T//64)) ---
    B2, T2, D2 = 2, 256, 128
    kx2, kt2, kw2, kb2, k3 = jax.random.split(k2, 5)
    x2 = jax.random.normal(kx2, (B2, T2, D2), dtype=jnp.float32)
    ts2 = jax.random.normal(kt2, (B2, 1, D2), dtype=jnp.float32)
    bound2 = 1.0 / (D2 ** 0.5)
    w2 = jax.random.uniform(kw2, (2 * D2, D2), jnp.float32, -bound2, bound2)
    b2 = jax.random.uniform(kb2, (2 * D2,), jnp.float32, -bound2, bound2)

    out2 = jax.block_until_ready(ada_layer_norm(x2, ts2, w2, b2, tile_t=64))
    ref2 = _reference(x2, ts2, w2, b2)
    assert out2.shape == (B2, T2, D2)
    assert jnp.allclose(out2.astype(jnp.float32), ref2, atol=1e-4, rtol=1e-4)

    # --- 3) bf16 activations (f32 params), auto tiling ---
    B3, T3, D3 = 2, 64, 128
    kx3, kt3, kw3, kb3 = jax.random.split(k3, 4)
    x3 = jax.random.normal(kx3, (B3, T3, D3), dtype=jnp.bfloat16)
    ts3 = jax.random.normal(kt3, (B3, 1, D3), dtype=jnp.bfloat16)
    bound3 = 1.0 / (D3 ** 0.5)
    w3 = jax.random.uniform(kw3, (2 * D3, D3), jnp.float32, -bound3, bound3)
    b3 = jax.random.uniform(kb3, (2 * D3,), jnp.float32, -bound3, bound3)

    out3 = jax.block_until_ready(ada_layer_norm(x3, ts3, w3, b3))
    ref3 = _reference(x3, ts3, w3, b3)
    assert out3.shape == (B3, T3, D3) and out3.dtype == jnp.bfloat16
    assert jnp.allclose(out3.astype(jnp.float32), ref3, atol=3e-2, rtol=3e-2)

    print("KERNEL_OK")
</pallas_src>

<mosaic_0001>
module attributes {stable_mosaic.version = 11 : i64} {
  func.func @_ada_ln_kernel(%arg0: i32, %arg1: i32, %arg2: memref<1x1x32xf32, #tpu.memory_space<vmem>>, %arg3: memref<1x1x32xf32, #tpu.memory_space<vmem>>, %arg4: memref<1x8x32xf32, #tpu.memory_space<vmem>>, %arg5: memref<1x8x32xf32, #tpu.memory_space<vmem>>) attributes {dimension_semantics = [#tpu.dimension_semantics<parallel>, #tpu.dimension_semantics<parallel>], iteration_bounds = array<i64: 2, 1>, scalar_prefetch = 0 : i64, scratch_operands = 0 : i64, tpu.core_type = #tpu.core_type<tc>, window_params = [{transform_indices = @transform_0, window_bounds = array<i64: 1, 1, 32>}, {transform_indices = @transform_1, window_bounds = array<i64: 1, 1, 32>}, {transform_indices = @transform_2, window_bounds = array<i64: 1, 8, 32>}, {transform_indices = @transform_3, window_bounds = array<i64: 1, 8, 32>}]} {
    %c0 = arith.constant 0 : index
    %c0_0 = arith.constant 0 : index
    %c0_1 = arith.constant 0 : index
    %0 = vector.load %arg4[%c0, %c0_0, %c0_1] : memref<1x8x32xf32, #tpu.memory_space<vmem>>, vector<1x8x32xf32>
    %cst = arith.constant dense<0.000000e+00> : vector<1x8xf32>
    %1 = vector.multi_reduction <add>, %0, %cst [2] : vector<1x8x32xf32> to vector<1x8xf32>
    %2 = vector.shape_cast %1 : vector<1x8xf32> to vector<1x8x1xf32>
    %3 = arith.mulf %0, %0 : vector<1x8x32xf32>
    %cst_2 = arith.constant dense<0.000000e+00> : vector<1x8xf32>
    %4 = vector.multi_reduction <add>, %3, %cst_2 [2] : vector<1x8x32xf32> to vector<1x8xf32>
    %5 = vector.shape_cast %4 : vector<1x8xf32> to vector<1x8x1xf32>
    %cst_3 = arith.constant 3.125000e-02 : f32
    %6 = vector.broadcast %cst_3 : f32 to vector<1x8x1xf32>
    %7 = arith.mulf %2, %6 : vector<1x8x1xf32>
    %cst_4 = arith.constant 3.125000e-02 : f32
    %8 = vector.broadcast %cst_4 : f32 to vector<1x8x1xf32>
    %9 = arith.mulf %5, %8 : vector<1x8x1xf32>
    %10 = arith.mulf %7, %7 : vector<1x8x1xf32>
    %11 = arith.subf %9, %10 : vector<1x8x1xf32>
    %cst_5 = arith.constant 0.000000e+00 : f32
    %12 = vector.broadcast %cst_5 : f32 to vector<1x8x1xf32>
    %13 = arith.maximumf %11, %12 : vector<1x8x1xf32>
    %14 = vector.broadcast %7 : vector<1x8x1xf32> to vector<1x8x32xf32>
    %15 = arith.subf %0, %14 : vector<1x8x32xf32>
    %cst_6 = arith.constant 9.99999974E-6 : f32
    %16 = vector.broadcast %cst_6 : f32 to vector<1x8x1xf32>
    %17 = arith.addf %13, %16 : vector<1x8x1xf32>
    %18 = math.rsqrt %17 : vector<1x8x1xf32>
    %19 = vector.broadcast %18 : vector<1x8x1xf32> to vector<1x8x32xf32>
    %20 = arith.mulf %15, %19 : vector<1x8x32xf32>
    %c0_7 = arith.constant 0 : index
    %c0_8 = arith.constant 0 : index
    %c0_9 = arith.constant 0 : index
    %21 = vector.load %arg2[%c0_7, %c0_8, %c0_9] : memref<1x1x32xf32, #tpu.memory_space<vmem>>, vector<1x1x32xf32>
    %22 = vector.broadcast %21 : vector<1x1x32xf32> to vector<1x8x32xf32>
    %23 = arith.mulf %20, %22 : vector<1x8x32xf32>
    %c0_10 = arith.constant 0 : index
    %c0_11 = arith.constant 0 : index
    %c0_12 = arith.constant 0 : index
    %24 = vector.load %arg3[%c0_10, %c0_11, %c0_12] : memref<1x1x32xf32, #tpu.memory_space<vmem>>, vector<1x1x32xf32>
    %25 = vector.broadcast %24 : vector<1x1x32xf32> to vector<1x8x32xf32>
    %26 = arith.addf %23, %25 : vector<1x8x32xf32>
    %c0_13 = arith.constant 0 : index
    %c0_14 = arith.constant 0 : index
    %c0_15 = arith.constant 0 : index
    %27 = vector.load %arg5[%c0_13, %c0_14, %c0_15] : memref<1x8x32xf32, #tpu.memory_space<vmem>>, vector<1x8x32xf32>
    tpu.vector_store %arg5[%c0_13, %c0_14, %c0_15], %26 {strides = array<i32>} : memref<1x8x32xf32, #tpu.memory_space<vmem>>, vector<1x8x32xf32>,
    return
  }
  func.func @transform_0(%arg0: i32, %arg1: i32) -> (i32, i32, i32) {
    %c0_i32 = arith.constant 0 : i32
    %c0_i32_0 = arith.constant 0 : i32
    %c0_i32_1 = arith.constant 0 : i32
    return %arg0, %c0_i32, %c0_i32_0 : i32, i32, i32
  }
  func.func @transform_1(%arg0: i32, %arg1: i32) -> (i32, i32, i32) {
    %c0_i32 = arith.constant 0 : i32
    %c0_i32_0 = arith.constant 0 : i32
    %c0_i32_1 = arith.constant 0 : i32
    return %arg0, %c0_i32, %c0_i32_0 : i32, i32, i32
  }
  func.func @transform_2(%arg0: i32, %arg1: i32) -> (i32, i32, i32) {
    %c0_i32 = arith.constant 0 : i32
    %c0_i32_0 = arith.constant 0 : i32
    return %arg0, %arg1, %c0_i32 : i32, i32, i32
  }
  func.func @transform_3(%arg0: i32, %arg1: i32) -> (i32, i32, i32) {
    %c0_i32 = arith.constant 0 : i32
    %c0_i32_0 = arith.constant 0 : i32
    return %arg0, %arg1, %c0_i32 : i32, i32, i32
  }
}

</mosaic_0001>

<bundles_post_ra>
// kernel: tpu_custom_call.1
= control target key start
LH: loop header
LB: loop body
LE: loop exit
PB: predicated region body
PF: predicated region fallthrough
CT: control target
= control target key end

     0   :  { %8 = vsyncpa [#allocation3], 0  ;;  %s895_s0 = inlined_call_operand.hbm [shape: f32[2,1,32], index: 0, kind: input, shape index: {}]   ;;  %s896_s1 = inlined_call_operand.vmem [shape: f32[2,1,32], index: 1, kind: input, shape index: {}]   ;;  %s897_s2 = inlined_call_operand.hbm [shape: f32[2,8,32], index: 2, kind: input, shape index: {}]   ;;  %s898_s3 = inlined_call_operand.hbm [shape: f32[2,8,32], index: 3, kind: output, shape index: {}]  }
   0x1   :  { %10 = vsyncpa [#allocation3 + $0x1], 0 }
   0x2   :  { %11 = vsyncpa [#allocation6], 0 }
   0x3   :  { %13 = vsyncpa [#allocation6 + $0x1], 0 }
   0x4   :  { %14 = vsyncpa [#allocation4], 0 }
   0x5   :  { %16 = vsyncpa [#allocation4 + $0x1], 0  ;;  %s666_s12 = smov 0   ;;  %s668_s13 = smov 0  }
   0x6   :  { %s670_s14 = smov 0   ;;  %s672_s15 = smov 0  }
   0x7   :  { %s674_s16 = smov 0   ;;  %s676_s17 = smov 0  }
   0x8 LB: > { %s410_s18 = sadd.s32 4294967295, %s641_s17   ;;  %s411_s19 = sadd.s32 4294967294, %s641_s17   ;;  %s641_s17 = sphi %s676_s17, %s22_s17   ;;  %s637_s16 = sphi %s674_s16, %s918_s16   ;;  %s633_s15 = sphi %s672_s15, %s917_s15   ;;  %s629_s14 = sphi %s670_s14, %s916_s14   ;;  %s625_s13 = sphi %s668_s13, %s915_s13   ;;  %s621_s12 = sphi %s666_s12, %s914_s12  }
   0x9   : > { %s34_s20 = sadd.s32 1, %s637_s16  ;;  %s41_s21 = sadd.s32 1, %s629_s14 }
   0xa   : > { %p36_p0 = scmp.ge.s32.totalorder %s34_s20, 2  ;;  %p48_p1 = scmp.ne.s32.totalorder %s629_s14, %s625_s13 }
   0xb   : > { %p49_p2 = scmp.eq.s32.totalorder %s641_s17, 0  ;;  %p54_p3 = scmp.ne.s32.totalorder %s625_s13, %s621_s12 }
   0xc   : > { %s920_s20 = smov (%p36_p0, %s34_s20), 0  ;;  %p55_p5 = scmp.eq.s32.totalorder %s410_s18, 0 }
   0xd   : > { %p707_p4 = por %p49_p2, %p48_p1  ;;  %s38_s23 = ssub.s32 %s637_s16, %s920_s20 }
   0xe   : > { %p134_p6 = scmp.eq.s32.totalorder %s410_s18, 1  ;;  %p39_p7 = scmp.eq.s32.totalorder %s38_s23, 0 }
   0xf   : > { %p713_p8 = por %p55_p5, %p54_p3  ;;  %p140_p10 = scmp.eq.s32.totalorder %s411_s19, 1 }
  0x10   : > { %p717_p9 = por %p134_p6, %p48_p1  ;;  %p443_p13 = scmp.lt.s32.totalorder %s641_s17, 2 }
  0x11   : > { %s902_s24 = scalar_select %p713_p8, 1, 0 }
  0x12   : > { %s903_s25 = scalar_select %p717_p9, 1, 0 }
  0x13   : > { %s722_s26 = scalar_select %p39_p7, %s629_s14, %s41_s21  }
  0x14   : > { %p724_p11 = por %p140_p10, %p54_p3  ;;  %s731_s28 = sand.u32 1, %s629_s14  }
  0x15   : > { %s414_s29 = sshll.u32 %s637_s16, 4  ;;  %s163_s30 = scalar_lea.vmem [#allocation2], %s731_s28 }
  0x16   : > { %s904_s27 = scalar_select %p724_p11, 1, 0 }
  0x17   : > { %s170_s4 = sshll.u32 %s163_s30, 4  ;;  %s738_s7 = scalar_lea.hbm %s895_s0, %s414_s29  ;;  %s740_s4 = int_to_ptr.vmem [resolvable:$true] %s170_s4 }
  0x18   : > { %p744_p0 = pnand %p443_p13, %p707_p4  ;;  %s415_s9 = sshll.u32 %s731_s28, 3 }
  0x19   : > { %s161_s10 = scalar_lea.sflag [#allocation3], %s731_s28  ;;  %s495_s11 = scalar_lea.hbm %s738_s7, 16 }
  0x1a   : > { %p496_p3 = scmp.ne.s32.totalorder %s738_s7, %s495_s11  ;;  %p497_p5 = pneg %p744_p0 }
  0x1b   : > { %s500_s21 = scalar_lea.hbm %s895_s0, 32  ;;  %p501_p4 = scmp.lt.u32.totalorder %s738_s7, %s895_s0 }
  0x1c   : > { %p498_p6 = pnand %p497_p5, %p496_p3  ;;  %p502_p10 = scmp.lt.u32.totalorder %s500_s21, %s495_s11 }
  0x1d   : > { %p504_p12 = scmp.lt.u32.totalorder %s495_s11, %s738_s7 }
  0x1e   : > { %p499_p7 = pneg %p498_p6  ;;  %p503_p13 = por %p502_p10, %p501_p4 }
  0x20   : > { %p505_p1 = por %p504_p12, %p503_p13 }
  0x22   : > { %p506_p2 = pnand %p505_p1, %p499_p7 }
  0x24   : > { %509 = shalt.err (!%p506_p2)
}
  0x25   : > { %s510_s29 = scalar_lea.vmem %s740_s4, 16  ;;  %s643_s30 = smov [#allocation2]  }
  0x26   : > { %p511_p3 = scmp.ne.s32.totalorder %s740_s4, %s510_s29  ;;  %s515_s5 = sshll.u32 %s643_s30, 4  ;;  %s516_s5 = int_to_ptr.vmem [resolvable:$false] %s515_s5 }
  0x27   : > { %s517_s6 = scalar_lea.vmem %s516_s5, 32  ;;  %p518_p9 = scmp.lt.s32.totalorder %s740_s4, %s516_s5 }
  0x28   : > { %p513_p6 = pnand %p511_p3, %p497_p5  ;;  %p519_p4 = scmp.lt.s32.totalorder %s517_s6, %s510_s29 }
  0x2a   : > { %p514_p11 = pneg %p513_p6  ;;  %p520_p10 = por %p519_p4, %p518_p9 }
  0x2c   : > { %p521_p12 = pnand %p520_p10, %p514_p11 }
  0x2e   : > { %524 = shalt.err (!%p521_p12)
}
  0x2f   : > { %435 = dma.hbm_to_vmem [thread:$0]  (!%p744_p0), %s738_s7, 16, %s740_s4, %s161_s10  }
  0x30   : > { %p906_p1 = scmp.lt.s32.totalorder %s641_s17, 3  ;;  %p907_p2 = scmp.ge.s32.totalorder %s641_s17, 1 }
  0x31   : > { %s416_s18 = sshll.u32 %s637_s16, 7  ;;  %s187_s19 = scalar_lea.vmem [#allocation5], %s415_s9 }
  0x32   : > { %p781_p7 = pnand %p907_p2, %p906_p1  ;;  %s195_s21 = sshll.u32 %s187_s19, 4  ;;  %s196_s21 = int_to_ptr.vmem [resolvable:$true] %s195_s21 }
  0x33   : > { %s791_s29 = scalar_lea.hbm %s897_s2, %s416_s18  ;;  %s184_s4 = scalar_lea.sflag [#allocation6], %s731_s28 }
  0x34   : > { %s908_s11 = scalar_select %p781_p7, 1, 0 }
  0x35   : > { %s525_s7 = scalar_lea.hbm %s791_s29, 128  ;;  %s530_s30 = scalar_lea.hbm %s897_s2, 256 }
  0x36   : > { %p526_p9 = scmp.ne.s32.totalorder %s791_s29, %s525_s7  ;;  %p531_p3 = scmp.lt.u32.totalorder %s791_s29, %s897_s2 }
  0x37   : > { %p532_p6 = scmp.lt.u32.totalorder %s530_s30, %s525_s7  ;;  %p534_p10 = scmp.lt.u32.totalorder %s525_s7, %s791_s29 }
  0x38   : > { %p528_p11 = pnand %p526_p9, %p497_p5 }
  0x39   : > { %p533_p4 = por %p532_p6, %p531_p3 }
  0x3a   : > { %p529_p13 = pneg %p528_p11 }
  0x3b   : > { %p535_p12 = por %p534_p10, %p533_p4 }
  0x3d   : > { %p536_p1 = pnand %p535_p12, %p529_p13 }
  0x3f   : > { %539 = shalt.err (!%p536_p1)
}
  0x40   : > { %s540_s28 = scalar_lea.vmem %s196_s21, 128  ;;  %s644_s18 = smov [#allocation5]  }
  0x41   : > { %p541_p2 = scmp.ne.s32.totalorder %s196_s21, %s540_s28  ;;  %s545_s19 = sshll.u32 %s644_s18, 4  ;;  %s546_s19 = int_to_ptr.vmem [resolvable:$false] %s545_s19 }
  0x42   : > { %s547_s22 = scalar_lea.vmem %s546_s19, 256  ;;  %p548_p8 = scmp.lt.s32.totalorder %s196_s21, %s546_s19 }
  0x43   : > { %p543_p9 = pnand %p541_p2, %p497_p5  ;;  %p549_p7 = scmp.lt.s32.totalorder %s547_s22, %s540_s28 }
  0x45   : > { %p544_p11 = pneg %p543_p9  ;;  %p550_p3 = por %p549_p7, %p548_p8 }
  0x47   : > { %p551_p6 = pnand %p550_p3, %p544_p11 }
  0x49   : > { %554 = shalt.err (!%p551_p6)
}
  0x4a   : > { %438 = dma.hbm_to_vmem [thread:$0]  (!%p744_p0), %s791_s29, 128, %s196_s21, %s184_s4  }
  0x4b   : > { %p909_p13 = scmp.ne.s32.totalorder %s908_s11, 0 }
  0x4c   : > { %s816_s23 = sand.u32 (!%p909_p13), 1, %s625_s13   ;;  %p910_p5 = scmp.ne.s32.totalorder (!%p909_p13), %s902_s24, 0 }
  0x4d   : > { %204 = sbr.rel (%p909_p13) target bundleno = 275 (0x113), region = 32  ;;  %s207_s7 = scalar_lea.sflag (!%p909_p13), [#allocation3], %s816_s23 }
  0x4e   : > { %s209_s10 = scalar_lea.vmem (!%p909_p13), [#allocation2], %s816_s23 }
  0x54   : > { %608 = dma.done.wait (%p910_p5), %s207_s7, 16  }
  0x55   : > { %610 = vsyncadd (%p910_p5), %s207_s7, 4294967280  ;;  %s418_s8 = sshll.u32 %s816_s23, 3  ;;  %s215_s11 = scalar_lea.sflag [#allocation6], %s816_s23 }
  0x56   : > { %s218_s21 = scalar_lea.vmem [#allocation5], %s418_s8 }
  0x57   : > { %612 = dma.done.wait (%p910_p5), %s215_s11, 128  }
  0x58   : > { %614 = vsyncadd (%p910_p5), %s215_s11, 4294967168  ;;  %vm252_vm0 = vcmask 261120   ;;  %v251_v0 = vld [vmem:[%s218_s21] sm:$0xff]  ;;  %p248_p8 = scmp.lt.s32.totalorder %s633_s15, 1  ;;  %v420_v14 = vld [vmem:[%s209_s10] ss:$0 sm:$0xff] }
  0x59   : > { %v253_v1 = vsel %vm252_vm0, %v251_v0, 0.0  ;;  %v256_v2 = vmul.f32 %v251_v0, %v251_v0  ;;  %s423_s30 = sshll.u32 %s633_s15, 7  ;;  %s247_s5 = scalar_lea.vmem [#allocation7], %s418_s8 }
  0x5a   : > { %254 = vadd.xlane.f32.xlu0 %v253_v1  ;;  %s249_s24 = scalar_select %p248_p8, %s633_s15, 1 }
  0x5b   : > { %v257_v3 = vsel %vm252_vm0, %v256_v2, 0.0  ;;  %s301_s6 = sshll.u32 %s247_s5, 4  ;;  %s845_s19 = scalar_lea.hbm %s898_s3, %s423_s30  ;;  %s847_s6 = int_to_ptr.vmem [resolvable:$true] %s301_s6 }
  0x5c   : > { %s250_s9 = scalar_lea.vmem %s896_s1, %s249_s24  ;;  %s287_s22 = scalar_lea.sflag [#allocation4], %s816_s23 }
  0x5d   : > { %v421_v16 = vld [vmem:[%s250_s9] ss:$0 sm:$0xff]  ;;  %s555_s7 = scalar_lea.vmem %s847_s6, 128  ;;  %p911_p7 = scmp.ne.s32.totalorder %s903_s25, 0 }
  0x5e   : > { %258 = vadd.xlane.f32.xlu0 %v257_v3  ;;  %p556_p0 = scmp.ne.s32.totalorder %s847_s6, %s555_s7  ;;  %s645_s15 = smov [#allocation7]  }
  0x5f   : > { %s559_s10 = sshll.u32 %s645_s15, 4  ;;  %s560_s10 = int_to_ptr.vmem [resolvable:$false] %s559_s10 }
  0x60   : > { %p557_p4 = pnand %p556_p0, %p911_p7  ;;  %s561_s8 = scalar_lea.vmem %s560_s10, 256 }
  0x61   : > { %p562_p12 = scmp.lt.s32.totalorder %s847_s6, %s560_s10  ;;  %p563_p1 = scmp.lt.s32.totalorder %s561_s8, %s555_s7 }
  0x62   : > { %p558_p10 = pneg %p557_p4 }
  0x63   : > { %p564_p2 = por %p563_p1, %p562_p12 }
  0x65   : > { %p565_p9 = pnand %p564_p2, %p558_p10 }
  0xe7   : > { %v255_v4 = vpop.xlane.xlu0 %254 }
  0xe8   : > { %v260_v5 = vmul.f32 0.03125, %v255_v4 }
  0xea   : > { %v262_v7 = vmul.f32 %v260_v5, %v260_v5  ;;  %v265_v12 = vsub.f32 %v251_v0, %v260_v5 }
  0xeb   : > { %v259_v6 = vpop.xlane.xlu0 %258 }
  0xec   : > { %v261_v8 = vmul.f32 0.03125, %v259_v6 }
  0xee   : > { %v263_v9 = vsub.f32 %v261_v8, %v262_v7 }
  0xf0   : > { %v264_v10 = vmax.f32 %v263_v9, 0.0 }
  0xf2   : > { %v266_v11 = vadd.f32 1e-05, %v264_v10 }
  0xf4   : > { %493 = vrsqrt.f32 %v266_v11 }
  0xfe   : > { %v494_v13 = vpop.eup %493 }
  0xff   : > { %v268_v15 = vmul.f32 %v494_v13, %v265_v12 }
 0x101   : > { %v276_v17 = vmul.f32 %v420_v14, %v268_v15 }
 0x103   : > { %v284_v18 = vadd.f32 %v421_v16, %v276_v17 }
 0x105   : > { %285 = vst.msk [vmem:[%s247_s5] sm:$0xff] %vm252_vm0, %v284_v18 }
 0x106   : > { %568 = shalt.err (!%p565_p9)
}
 0x107   : > { %s569_s23 = scalar_lea.hbm %s845_s19, 128  ;;  %s573_s24 = scalar_lea.hbm %s898_s3, 256 }
 0x108   : > { %p570_p11 = scmp.ne.s32.totalorder %s845_s19, %s569_s23  ;;  %p574_p13 = scmp.lt.u32.totalorder %s845_s19, %s898_s3 }
 0x109   : > { %p575_p5 = scmp.lt.u32.totalorder %s573_s24, %s569_s23  ;;  %p577_p0 = scmp.lt.u32.totalorder %s569_s23, %s845_s19 }
 0x10a   : > { %p571_p3 = pnand %p570_p11, %p911_p7 }
 0x10b   : > { %p576_p8 = por %p575_p5, %p574_p13 }
 0x10c   : > { %p572_p6 = pneg %p571_p3 }
 0x10d   : > { %p578_p4 = por %p577_p0, %p576_p8 }
 0x10f   : > { %p579_p10 = pnand %p578_p4, %p572_p6 }
 0x111   : > { %582 = shalt.err (!%p579_p10)
}
 0x112   : > { %430 = dma.vmem_to_hbm [thread:$0]  (%p911_p7), %s847_s6, 128, %s845_s19, %s287_s22  }
 0x113 PF: > { %s313_s9 = sand.u32 1, %s621_s12   ;;  %p912_p12 = scmp.ne.s32.totalorder %s904_s27, 0 }
 0x114   : > { %p913_p1 = scmp.ge.s32.totalorder %s641_s17, 2  ;;  %s314_s30 = scalar_lea.sflag [#allocation4], %s313_s9 }
 0x116   : > { %p440_p2 = pnand %p913_p1, %p912_p12 }
 0x118   : > { %616 = dma.done.wait (!%p440_p2), %s314_s30, 128  }
 0x119   : > { %618 = vsyncadd (!%p440_p2), %s314_s30, 4294967168  ;;  %s22_s17 = sadd.s32 1, %s641_s17   ;;  %s914_s12 = smov %s625_s13 }
 0x11a   : > { %p19_p9 = scmp.ge.s32.totalorder %s22_s17, 4   ;;  %s915_s13 = smov %s629_s14 }
 0x11b   : > { %s916_s14 = smov %s722_s26  ;;  %s917_s15 = smov %s637_s16 }
 0x11c   : > { %s918_s16 = smov %s920_s20  ;;  %21 = sbr.rel (!%p19_p9) target bundleno = 8 (0x8), region = 93 }
 0x123   :  { %319 = vsyncpa [#allocation3], 1 }
 0x124   :  { %321 = vsyncpa [#allocation3 + $0x1], 1 }
 0x125   :  { %322 = vsyncpa [#allocation6], 1 }
 0x126   :  { %324 = vsyncpa [#allocation6 + $0x1], 1 }
 0x127   :  { %325 = vsyncpa [#allocation4], 1 }
 0x128   :  { %327 = vsyncpa [#allocation4 + $0x1], 1 }

</bundles_post_ra>
